<compile_context>
chip_gen: v7x
topology: tpu7x:2x2x1
jax: 0.10.0
libtpu: 0.0.40
codegen_flags: <defaults>
</compile_context>

<pallas_src>
import jax
import jax.numpy as jnp
from jax.experimental import pallas as pl
from jax.experimental.pallas import tpu as pltpu


# ----------------------------------------------------------------------------
# Pallas kernel (fusion stub): scalar pass-through, routed through SMEM.
# ----------------------------------------------------------------------------
def _alpha_forward_kernel(alpha_ref, out_ref):
    # forward(): return alpha_val  (the 1.0* multiply is a no-op; folded away)
    out_ref[0] = alpha_ref[0]


def alpha_forward_pallas(alpha_val: jax.Array) -> jax.Array:
    """Pallas version of Alpha.forward().

    Keeps the scalar in SMEM end-to-end (no VMEM tile / vreg traffic). Only
    use this if a kernel boundary is structurally required; otherwise prefer
    `alpha_forward` below.
    """
    alpha_1d = jnp.reshape(alpha_val.astype(jnp.float32), (1,))
    out = pl.pallas_call(
        _alpha_forward_kernel,
        out_shape=jax.ShapeDtypeStruct((1,), jnp.float32),
        in_specs=[pl.BlockSpec(memory_space=pltpu.MemorySpace.SMEM)],
        out_specs=pl.BlockSpec(memory_space=pltpu.MemorySpace.SMEM),
    )(alpha_1d)
    return out[0]


# ----------------------------------------------------------------------------
# Default forward path: no kernel launch (highest-value optimization).
# ----------------------------------------------------------------------------
def alpha_forward(alpha_val: jax.Array) -> jax.Array:
    """Equivalent of Alpha.forward(): 1.0 * alpha is a scalar identity.

    Returning the 0-d f32 value directly lets XLA constant-fold/fuse it into
    any consumer; no HBM round-trip, no custom call.
    """
    return jnp.asarray(alpha_val, dtype=jnp.float32)


def reset_alpha(alpha_val: jax.Array, alpha_reset_val: jax.Array) -> jax.Array:
    """Functional equivalent of Alpha.reset_alpha(): returns the reset value.

    (Plain JAX glue — no hot-path compute, so no kernel needed.)
    """
    del alpha_val
    return jnp.asarray(alpha_reset_val, dtype=jnp.float32)


class AlphaPallas:
    """JAX/Pallas port of the PyTorch `Alpha` module."""

    def __init__(self, alpha_reset_val: float = 1e-05):
        # Deterministic init matching nn.Parameter(torch.tensor(5.0))
        self.alpha_val = jnp.asarray(5.0, dtype=jnp.float32)
        self.alpha_reset_val = jnp.asarray(alpha_reset_val, dtype=jnp.float32)

    def forward(self) -> jax.Array:
        # Fast path: scalar identity, no Pallas launch.
        return alpha_forward(self.alpha_val)

    def forward_pallas(self) -> jax.Array:
        # Kernel path kept only as a fusion stub / for verification.
        return alpha_forward_pallas(self.alpha_val)

    def reset_alpha(self) -> None:
        self.alpha_val = reset_alpha(self.alpha_val, self.alpha_reset_val)


if __name__ == "__main__":
    # The module takes no input tensors; forward() only reads its parameter.
    # PRNGKey(0) only to keep the script-setup convention deterministic.
    _ = jax.random.PRNGKey(0)

    module = AlphaPallas(alpha_reset_val=1e-05)
    expected = jnp.float32(1.0 * 5.0)

    # Default (kernel-free) forward path.
    out = module.forward()
    jax.block_until_ready(out)
    assert out.shape == (), f"expected scalar output, got shape {out.shape}"
    assert out.dtype == jnp.float32, f"expected float32, got {out.dtype}"
    assert jnp.allclose(out, expected), f"expected {expected}, got {out}"

    # Pallas (SMEM scalar) path — run the kernel once and verify it matches.
    out_k = module.forward_pallas()
    jax.block_until_ready(out_k)
    assert out_k.shape == (), f"expected scalar output, got shape {out_k.shape}"
    assert out_k.dtype == jnp.float32, f"expected float32, got {out_k.dtype}"
    assert jnp.allclose(out_k, expected), f"expected {expected}, got {out_k}"

    # Also exercise reset_alpha (non-forward path, plain JAX).
    module.reset_alpha()
    assert jnp.allclose(module.alpha_val, jnp.float32(1e-05))

    print("KERNEL_OK")
</pallas_src>

<mosaic_0001>
module attributes {stable_mosaic.version = 11 : i64} {
  func.func @_alpha_forward_kernel(%arg0: memref<1xf32, #tpu.memory_space<smem>>, %arg1: memref<1xf32, #tpu.memory_space<smem>>) attributes {dimension_semantics = [], scalar_prefetch = 0 : i64, scratch_operands = 0 : i64, tpu.core_type = #tpu.core_type<tc>} {
    %c0 = arith.constant 0 : index
    %0 = memref.load %arg0[%c0] : memref<1xf32, #tpu.memory_space<smem>>
    %c0_0 = arith.constant 0 : index
    %1 = memref.load %arg1[%c0_0] : memref<1xf32, #tpu.memory_space<smem>>
    memref.store %0, %arg1[%c0_0] : memref<1xf32, #tpu.memory_space<smem>>
    return
  }
}

</mosaic_0001>

<bundles_post_ra>
// kernel: tpu_custom_call.1
= control target key start
LH: loop header
LB: loop body
LE: loop exit
PB: predicated region body
PF: predicated region fallthrough
CT: control target
= control target key end

     0   :  { %7 = vsyncpa [#allocation4], 0  ;;  %s65_s0 = inlined_call_operand.<no memory space> [shape: f32[1], index: 0, kind: input, shape index: {}]   ;;  %s66_s1 = inlined_call_operand.hbm [shape: f32[1], index: 1, kind: output, shape index: {}]  }
   0x1   :  { %12 = sst [smem:[#allocation3]] %s65_s0  ;;  %s27_s10 = scalar_lea.hbm %s66_s1, 16 }
   0x2   :  { %p28_p0 = scmp.ne.s32.totalorder %s66_s1, %s27_s10  ;;  %p31_p1 = scmp.lt.u32.totalorder %s27_s10, %s66_s1 }
   0x4   :  { %p33_p2 = pnand %p31_p1, %p28_p0 }
   0x6   :  { %36 = shalt.err (!%p33_p2)
}
   0x7   :  { %s39_s15 = smov [#allocation3]  }
   0x8   :  { %20 = dma.smem_to_hbm %s39_s15, 16, %s66_s1, [#allocation4]  }
   0x9   :  { %37 = dma.done.wait [#allocation4], 16  }
   0xa   :  { %38 = vsyncadd [#allocation4], 4294967280 }
   0xb   :  { %24 = sfence }
   0xc   :  { %25 = vsyncpa [#allocation4], 1 }

</bundles_post_ra>
